<compile_context>
chip_gen: v7x
topology: tpu7x:2x2x1
jax: 0.10.0
libtpu: 0.0.40
codegen_flags: <defaults>
</compile_context>

<pallas_src>
import functools

import jax
import jax.numpy as jnp
from jax import lax
from jax.experimental import pallas as pl
from jax.experimental.pallas import tpu as pltpu


# ---------------------------------------------------------------------------
# Kernel bodies
# ---------------------------------------------------------------------------

def _mean_rows_kernel(x_ref, o_ref):
    """Full-N row slab: (TM, N) -> lane-dense (1, TM) row means."""
    # f32 accumulation fused into the reduction (no materialized f32 slab).
    row_mean = jnp.mean(x_ref[...], axis=1, dtype=jnp.float32)   # (TM,)
    o_ref[...] = row_mean[None, :].astype(o_ref.dtype)           # (1, TM)


def _mean_rows_acc_kernel(x_ref, o_ref, acc_ref, *, n_total, n_block, mask_cols):
    """N-tiled accumulator: (TM, TN) blocks, f32 (1, TM) scratch accumulator."""
    k = pl.program_id(1)

    @pl.when(k == 0)
    def _():
        acc_ref[...] = jnp.zeros_like(acc_ref)

    x = x_ref[...]
    if mask_cols:  # static: only emitted when N % TN != 0
        col = k * n_block + lax.broadcasted_iota(jnp.int32, x_ref.shape, 1)
        x = jnp.where(col < n_total, x, jnp.zeros_like(x))

    acc_ref[...] += jnp.sum(x, axis=1, dtype=jnp.float32)[None, :]

    @pl.when(k == pl.num_programs(1) - 1)
    def _():
        o_ref[...] = (acc_ref[...] * (1.0 / n_total)).astype(o_ref.dtype)


# ---------------------------------------------------------------------------
# Wrapper / dispatch
# ---------------------------------------------------------------------------

def _vmem_budget_bytes() -> int:
    try:
        cap = pltpu.get_tpu_info().vmem_capacity_bytes
    except Exception:
        cap = 64 << 20  # safe minimum across v5e/v6e/v7x
    return int(0.72 * cap)


def simple_mean(x: jax.Array, *, _force_path: str | None = None) -> jax.Array:
    """torch.mean(x, dim=1) for a 2-D floating array, via Pallas."""
    assert x.ndim == 2, "SimpleMean expects a 2-D input"
    assert jnp.issubdtype(x.dtype, jnp.floating), "mean requires a floating dtype"

    m, n = x.shape
    itemsize = jnp.dtype(x.dtype).itemsize
    total_bytes = m * n * itemsize

    vmem_budget = _vmem_budget_bytes()                 # ~46 MiB v7x, ~92 MiB v5e/v6e
    target_slab = min(16 << 20, vmem_budget // 6)      # slab sweet spot, gen-aware

    cost = pl.CostEstimate(
        flops=m * n, transcendentals=0,
        bytes_accessed=total_bytes + m * itemsize,
    )

    if _force_path is not None:
        path = _force_path
    elif total_bytes <= (1 << 20):
        path = "tiny"
    elif 128 * n * itemsize <= target_slab:
        path = "rows"
    else:
        path = "wide"

    # ------------------------------------------------------------------ tiny
    if path == "tiny":
        out = pl.pallas_call(
            _mean_rows_kernel,
            out_shape=jax.ShapeDtypeStruct((1, m), x.dtype),
        )(x)
        return out.reshape(m)

    # ------------------------------------------------------------------ rows
    if path == "rows":
        # Largest power-of-2 multiple of 128 rows whose full-N slab fits budget.
        tm = 128
        while tm * 2 * n * itemsize <= target_slab and tm * 2 <= 4096:
            tm *= 2
        # Keep >=4 grid steps when possible so v7x's 2 TCs both stay busy.
        while tm > 128 and pl.cdiv(m, tm) < 4:
            tm //= 2

        grid_m = pl.cdiv(m, tm)
        m_pad = grid_m * tm
        slab_bytes = tm * n * itemsize
        vmem_limit = int(min(vmem_budget, 4 * slab_bytes + (16 << 20)))

        out = pl.pallas_call(
            _mean_rows_kernel,
            out_shape=jax.ShapeDtypeStruct((1, m_pad), x.dtype),
            grid=(grid_m,),
            in_specs=[pl.BlockSpec((tm, n), lambda i: (i, 0))],
            out_specs=pl.BlockSpec((1, tm), lambda i: (0, i)),
            compiler_params=pltpu.CompilerParams(
                dimension_semantics=("parallel",),
                vmem_limit_bytes=vmem_limit,
            ),
            cost_estimate=cost,
        )(x)
        return out[0, :m]

    # ------------------------------------------------------------------ wide
    # Very wide rows: tile N as well and accumulate in an f32 scratch.
    tm = 256
    tn = 128
    n_pad128 = pl.cdiv(n, 128) * 128
    while tm * (tn * 2) * itemsize <= target_slab and tn * 2 <= n_pad128:
        tn *= 2

    grid_m = pl.cdiv(m, tm)
    grid_n = pl.cdiv(n, tn)
    m_pad = grid_m * tm
    slab_bytes = tm * tn * itemsize
    vmem_limit = int(min(vmem_budget, 4 * slab_bytes + (16 << 20)))

    kernel = functools.partial(
        _mean_rows_acc_kernel, n_total=n, n_block=tn, mask_cols=(n % tn != 0)
    )

    out = pl.pallas_call(
        kernel,
        out_shape=jax.ShapeDtypeStruct((1, m_pad), x.dtype),
        grid=(grid_m, grid_n),
        in_specs=[pl.BlockSpec((tm, tn), lambda i, k: (i, k))],
        out_specs=pl.BlockSpec((1, tm), lambda i, k: (0, i)),
        scratch_shapes=[pltpu.VMEM((1, tm), jnp.float32)],
        compiler_params=pltpu.CompilerParams(
            dimension_semantics=("parallel", "arbitrary"),
            vmem_limit_bytes=vmem_limit,
        ),
        cost_estimate=cost,
    )(x)
    return out[0, :m]


# ---------------------------------------------------------------------------
# Self-test
# ---------------------------------------------------------------------------

if __name__ == "__main__":
    key = jax.random.PRNGKey(0)

    # 1) Module's example shape: torch.randn(4, 4) -> tiny (grid-free) path.
    x_small = jax.random.normal(key, (4, 4), dtype=jnp.float32)
    z_small = simple_mean(x_small)
    jax.block_until_ready(z_small)
    ref_small = jnp.mean(x_small, axis=1)
    assert z_small.shape == (4,), z_small.shape
    assert z_small.dtype == x_small.dtype, z_small.dtype
    assert jnp.allclose(z_small, ref_small, atol=1e-6, rtol=1e-6)

    # 2) Pipelined full-N row-slab path (adaptive tm, padded/sliced irregular M).
    x_rows = jax.random.normal(jax.random.PRNGKey(1), (2048, 512), dtype=jnp.float32)
    z_rows = simple_mean(x_rows)
    jax.block_until_ready(z_rows)
    assert z_rows.shape == (2048,)
    assert jnp.allclose(z_rows, jnp.mean(x_rows, axis=1), atol=1e-5, rtol=1e-5)

    # 3) N-tiled accumulator path (forced on a small shape so the test stays
    #    cheap): irregular M (partial row block) and N not a multiple of TN
    #    (masked last column block), multi-step accumulation over N.
    x_wide = jax.random.normal(jax.random.PRNGKey(2), (260, 3000), dtype=jnp.float32)
    z_wide = simple_mean(x_wide, _force_path="wide")
    jax.block_until_ready(z_wide)
    assert z_wide.shape == (260,)
    assert jnp.allclose(z_wide, jnp.mean(x_wide, axis=1), atol=1e-5, rtol=1e-5)

    # 4) bf16 input: f32 accumulation in-kernel, bf16 out (matches torch.mean dtype).
    x_bf16 = jax.random.normal(jax.random.PRNGKey(3), (64, 96), dtype=jnp.bfloat16)
    z_bf16 = simple_mean(x_bf16)
    jax.block_until_ready(z_bf16)
    ref_bf16 = jnp.mean(x_bf16.astype(jnp.float32), axis=1).astype(jnp.bfloat16)
    assert z_bf16.dtype == jnp.bfloat16
    assert jnp.allclose(z_bf16.astype(jnp.float32), ref_bf16.astype(jnp.float32),
                        atol=2e-2, rtol=2e-2)

    print("KERNEL_OK")
</pallas_src>

<mosaic_0001>
module attributes {stable_mosaic.version = 11 : i64} {
  func.func @_mean_rows_kernel(%arg0: memref<4x4xf32, #tpu.memory_space<vmem>>, %arg1: memref<1x4xf32, #tpu.memory_space<vmem>>) attributes {dimension_semantics = [], scalar_prefetch = 0 : i64, scratch_operands = 0 : i64, tpu.core_type = #tpu.core_type<tc>} {
    %c0 = arith.constant 0 : index
    %c0_0 = arith.constant 0 : index
    %0 = vector.load %arg0[%c0, %c0_0] : memref<4x4xf32, #tpu.memory_space<vmem>>, vector<4x4xf32>
    %cst = arith.constant dense<0.000000e+00> : vector<4xf32>
    %1 = vector.multi_reduction <add>, %0, %cst [1] : vector<4x4xf32> to vector<4xf32>
    %cst_1 = arith.constant 4.000000e+00 : f32
    %2 = vector.broadcast %cst_1 : f32 to vector<4xf32>
    %3 = arith.divf %1, %2 : vector<4xf32>
    %4 = vector.shape_cast %3 : vector<4xf32> to vector<1x4xf32>
    %c0_2 = arith.constant 0 : index
    %c0_3 = arith.constant 0 : index
    %5 = vector.load %arg1[%c0_2, %c0_3] : memref<1x4xf32, #tpu.memory_space<vmem>>, vector<1x4xf32>
    tpu.vector_store %arg1[%c0_2, %c0_3], %4 {strides = array<i32>} : memref<1x4xf32, #tpu.memory_space<vmem>>, vector<1x4xf32>,
    return
  }
}

</mosaic_0001>

<bundles_post_ra>
// kernel: tpu_custom_call.1
= control target key start
LH: loop header
LB: loop body
LE: loop exit
PB: predicated region body
PF: predicated region fallthrough
CT: control target
= control target key end

     0   :  { %6 = vsyncpa [#allocation3], 0  ;;  %s139_s0 = inlined_call_operand.hbm [shape: f32[4,4], index: 0, kind: input, shape index: {}]   ;;  %s140_s1 = inlined_call_operand.hbm [shape: f32[1,4], index: 1, kind: output, shape index: {}]  }
   0x1   :  { %7 = vsyncpa [#allocation4], 0  ;;  %s103_s6 = smov [#allocation2]   ;;  %s55_s10 = scalar_lea.hbm %s139_s0, 64 }
   0x2   :  { %s14_s7 = sshll.u32 %s103_s6, 4  ;;  %p56_p0 = scmp.ne.s32.totalorder %s139_s0, %s55_s10  ;;  %s15_s7 = int_to_ptr.vmem [resolvable:$true] %s14_s7 }
   0x3   :  { %p59_p1 = scmp.lt.u32.totalorder %s55_s10, %s139_s0 }
   0x5   :  { %p61_p2 = pnand %p59_p1, %p56_p0 }
   0x7   :  { %64 = shalt.err (!%p61_p2)
}
   0x8   :  { %s65_s15 = scalar_lea.vmem %s15_s7, 64  ;;  %p70_p4 = scmp.lt.s32.totalorder %s15_s7, %s15_s7 }
   0x9   :  { %p66_p3 = scmp.ne.s32.totalorder %s15_s7, %s65_s15  ;;  %p71_p5 = scmp.lt.s32.totalorder %s65_s15, %s65_s15 }
   0xb   :  { %p72_p6 = por %p71_p5, %p70_p4 }
   0xd   :  { %p73_p7 = pnand %p72_p6, %p66_p3 }
   0xf   :  { %76 = shalt.err (!%p73_p7)
}
  0x10   :  { %17 = dma.hbm_to_vmem [thread:$0]  %s139_s0, 64, %s15_s7, [#allocation3]  }
  0x11   :  { %99 = dma.done.wait [#allocation3], 64  }
  0x12   :  { %100 = vsyncadd [#allocation3], 4294967232  ;;  %vm22_vm0 = vcmask 27648   ;;  %v21_v0 = vld [vmem:[#allocation2] sm:$0xf]  ;;  %v29_v2 = vlaneseq  ;;  %s104_s18 = smov [#allocation5]  }
  0x13   :  { %v23_v1 = vsel %vm22_vm0, %v21_v0, 0.0  ;;  %s44_s19 = sshll.u32 %s104_s18, 4  ;;  %vm36_vm1 = vcmask 24576   ;;  %s45_s19 = int_to_ptr.vmem [resolvable:$true] %s44_s19 }
  0x14   :  { %24 = vadd.xlane.f32.xlu0 %v23_v1  ;;  %v30_v3 = vand.u32 127, %v29_v2  ;;  %v32_v4 = vshrl.u32 %v29_v2, 7  ;;  %s77_s20 = scalar_lea.vmem %s45_s19, 16  ;;  %s81_s0 = scalar_lea.vmem %s45_s19, 32 }
  0x15   :  { %p78_p8 = scmp.ne.s32.totalorder %s45_s19, %s77_s20  ;;  %p82_p9 = scmp.lt.s32.totalorder %s45_s19, %s45_s19 }
  0x16   :  { %v33_v5 = vsub.s32 %v30_v3, %v32_v4  ;;  %p83_p10 = scmp.lt.s32.totalorder %s81_s0, %s77_s20 }
  0x18   :  { %p84_p11 = por %p83_p10, %p82_p9 }
  0x1a   :  { %p85_p12 = pnand %p84_p11, %p78_p8 }
  0xa1   :  { %v25_v6 = vpop.xlane.xlu0 %24 }
  0xa2   :  { %v27_v7 = vmul.f32 0.25, %v25_v6 }
  0xa4   :  { %v34_v8 = vrot.slane %v27_v7, %v33_v5 }
  0xa6   :  { %37 = vst.msk [vmem:[#allocation5] sm:$0x1] %vm36_vm1, %v34_v8 }
  0xa7   :  { %88 = shalt.err (!%p85_p12)
}
  0xa8   :  { %s89_s23 = scalar_lea.hbm %s140_s1, 16 }
  0xa9   :  { %p90_p13 = scmp.ne.s32.totalorder %s140_s1, %s89_s23  ;;  %p93_p0 = scmp.lt.u32.totalorder %s89_s23, %s140_s1 }
  0xab   :  { %p95_p1 = pnand %p93_p0, %p90_p13 }
  0xad   :  { %98 = shalt.err (!%p95_p1)
}
  0xae   :  { %47 = dma.vmem_to_hbm [thread:$0]  %s45_s19, 16, %s140_s1, [#allocation4]  }
  0xaf   :  { %101 = dma.done.wait [#allocation4], 16  }
  0xb0   :  { %102 = vsyncadd [#allocation4], 4294967280 }
  0xb1   :  { %51 = vsyncpa [#allocation3], 1 }
  0xb2   :  { %52 = vsyncpa [#allocation4], 1 }

</bundles_post_ra>
